<compile_context>
chip_gen: v5e
topology: v5e:2x2
jax: 0.10.0
libtpu: 0.0.40
codegen_flags: <defaults>
</compile_context>

<pallas_src>
import jax
import jax.numpy as jnp
from jax import lax
from jax.experimental import pallas as pl
from jax.experimental.pallas import tpu as pltpu


def rnn_kernel(x_ref, lens_ref, w_ih_t_ref, w_hh_t_ref, b_ref,
               w_out_ref, b_out_ref, out_ref, xw_ref):
    """Whole forward pass in one kernel (no grid: problem is tiny).

    x_ref      : (T*B, I)  time-major flattened input (row t*B + b = x[b, t, :])
    lens_ref   : (B, 1)    int32 sequence lengths
    w_ih_t_ref : (I, H)    W_ih^T   (f32 or bf16)
    w_hh_t_ref : (H, H)    W_hh^T   (f32 or bf16)
    b_ref      : (1, H)    b_ih + b_hh (f32)
    w_out_ref  : (1, H)    output-layer weight row (f32)
    b_out_ref  : (1, 1)    output-layer bias (f32)
    out_ref    : (B, 1)    f32 output
    xw_ref     : (T*B, H)  f32 VMEM scratch: precomputed input projection + bias
    """
    B = lens_ref.shape[0]
    TB, H = xw_ref.shape
    T = TB // B

    # ---- (1) One big matmul for the input projection of ALL timesteps, with the
    # bias folded in. This removes T tiny matmuls + T bias broadcasts from the
    # serial recurrence.
    xw_ref[...] = (
        jnp.dot(x_ref[...], w_ih_t_ref[...], preferred_element_type=jnp.float32)
        + b_ref[...]
    )

    # Hoisted loads (fori_loop body is traced once; these become loop-invariant).
    lens = lens_ref[...]                      # (B, 1) int32
    w_hh = w_hh_t_ref[...]                    # (H, H), dtype = MXU operand dtype

    h0 = jnp.zeros((B, H), jnp.float32)

    # ---- (2) Serial recurrence: per step only (B,H)@(H,H) + tanh + masked select.
    # h is carried in vregs (loop carry), never stored back to VMEM inside the loop.
    def step(t, h_prev):
        xw_t = xw_ref[pl.ds(t * B, B), :]     # (B, H) f32, bias already included
        pre = xw_t + jnp.dot(h_prev.astype(w_hh.dtype), w_hh,
                             preferred_element_type=jnp.float32)
        h_new = jnp.tanh(pre)                 # EUP, f32
        alive = t < lens                      # (B, 1) -> broadcast over H
        # pack_padded_sequence semantics: h freezes once t >= lengths[b].
        return jnp.where(alive, h_new, h_prev)

    h = lax.fori_loop(0, T, step, h0, unroll=True)

    # ---- (3) output_layer: VPU multiply + XLU lane reduce (avoid N=1 MXU matmul).
    out_ref[...] = (
        jnp.sum(h * w_out_ref[...], axis=-1, keepdims=True) + b_out_ref[...]
    )


def vanilla_rnn_forward(x, lengths, params, *, mxu_dtype=jnp.float32):
    """x: (B, T, I) f32; lengths: (B,) int (sorted descending, as
    pack_padded_sequence with enforce_sorted=True requires).
    Returns (1, B, 1) f32, matching PyTorch's output_layer(hiddens).

    mxu_dtype: jnp.float32 (exact) or jnp.bfloat16 (MXU operands only, for
    v6e/v7x; hidden state / tanh / accumulation stay f32)."""
    B, T, I = x.shape
    H = params["w_hh"].shape[0]

    # Wrapper-side layout plumbing (cheap XLA ops, off the kernel's serial path):
    # time-major flatten so the kernel does one (T*B, I) @ (I, H) matmul.
    x2d = jnp.transpose(x, (1, 0, 2)).reshape(T * B, I).astype(mxu_dtype)
    lens2d = lengths.astype(jnp.int32).reshape(B, 1)
    w_ih_t = params["w_ih"].T.astype(mxu_dtype)            # (I, H)
    w_hh_t = params["w_hh"].T.astype(mxu_dtype)            # (H, H)
    b = (params["b_ih"] + params["b_hh"]).reshape(1, H).astype(jnp.float32)
    w_out_row = params["w_out"].reshape(1, H).astype(jnp.float32)
    b_out = params["b_out"].reshape(1, 1).astype(jnp.float32)

    vmem = pl.BlockSpec(memory_space=pltpu.MemorySpace.VMEM)

    out = pl.pallas_call(
        rnn_kernel,
        out_shape=jax.ShapeDtypeStruct((B, 1), jnp.float32),
        in_specs=[vmem] * 7,
        out_specs=vmem,
        scratch_shapes=[pltpu.VMEM((T * B, H), jnp.float32)],
    )(x2d, lens2d, w_ih_t, w_hh_t, b, w_out_row, b_out)

    # PyTorch: hiddens is (num_layers*num_dirs, B, H) -> output (1, B, 1)
    return out.reshape(1, B, 1)


def init_params(key, input_size, hidden_size):
    """Mirror PyTorch's U(-1/sqrt(H), 1/sqrt(H)) init for RNN and Linear."""
    k = jax.random.split(key, 6)
    bound = 1.0 / jnp.sqrt(hidden_size)
    return {
        "w_ih": jax.random.uniform(k[0], (hidden_size, input_size),
                                   jnp.float32, -bound, bound),
        "w_hh": jax.random.uniform(k[1], (hidden_size, hidden_size),
                                   jnp.float32, -bound, bound),
        "b_ih": jax.random.uniform(k[2], (hidden_size,),
                                   jnp.float32, -bound, bound),
        "b_hh": jax.random.uniform(k[3], (hidden_size,),
                                   jnp.float32, -bound, bound),
        "w_out": jax.random.uniform(k[4], (1, hidden_size),
                                    jnp.float32, -bound, bound),
        "b_out": jax.random.uniform(k[5], (1,),
                                    jnp.float32, -bound, bound),
    }


def reference_forward(x, lengths, params):
    """Pure-JAX f32 reference reproducing pack_padded_sequence + RNN + Linear."""
    B, T, I = x.shape
    H = params["w_hh"].shape[0]
    h = jnp.zeros((B, H), jnp.float32)
    for t in range(T):
        pre = (x[:, t, :] @ params["w_ih"].T + params["b_ih"]
               + h @ params["w_hh"].T + params["b_hh"])
        h_new = jnp.tanh(pre)
        mask = (t < lengths)[:, None]
        h = jnp.where(mask, h_new, h)
    out = h @ params["w_out"].T + params["b_out"]   # (B, 1)
    return out.reshape(1, B, 1)


if __name__ == "__main__":
    key = jax.random.PRNGKey(0)
    k_x, k_p = jax.random.split(key)

    B, T, INPUT_SIZE, HIDDEN_SIZE = 2, 8, 16, 32

    x = jax.random.normal(k_x, (B, T, INPUT_SIZE), jnp.float32)
    # pack_padded_sequence (enforce_sorted=True) requires descending lengths.
    lengths = jnp.array([8, 5], dtype=jnp.int32)

    params = init_params(k_p, INPUT_SIZE, HIDDEN_SIZE)
    ref = reference_forward(x, lengths, params)

    # Exact (f32 MXU) path — strict check against the f32 reference.
    out_f32 = jax.block_until_ready(vanilla_rnn_forward(x, lengths, params))
    assert out_f32.shape == (1, B, 1), out_f32.shape
    assert jnp.allclose(out_f32, ref, atol=1e-5, rtol=1e-5), (out_f32, ref)

    # bf16-MXU-operand path (v6e/v7x recommendation) — looser tolerance since the
    # matmul operands are rounded to bf16 (state/accumulation remain f32).
    out_bf16 = jax.block_until_ready(
        vanilla_rnn_forward(x, lengths, params, mxu_dtype=jnp.bfloat16))
    assert out_bf16.shape == (1, B, 1), out_bf16.shape
    assert jnp.allclose(out_bf16, ref, atol=5e-2, rtol=0.0), (out_bf16, ref)

    print("KERNEL_OK")
</pallas_src>

<mosaic_0001>
module attributes {stable_mosaic.version = 11 : i64} {
  func.func @rnn_kernel(%arg0: memref<16x16xf32, #tpu.memory_space<vmem>>, %arg1: memref<2x1xi32, #tpu.memory_space<vmem>>, %arg2: memref<16x32xf32, #tpu.memory_space<vmem>>, %arg3: memref<32x32xf32, #tpu.memory_space<vmem>>, %arg4: memref<1x32xf32, #tpu.memory_space<vmem>>, %arg5: memref<1x32xf32, #tpu.memory_space<vmem>>, %arg6: memref<1x1xf32, #tpu.memory_space<vmem>>, %arg7: memref<2x1xf32, #tpu.memory_space<vmem>>, %arg8: memref<16x32xf32, #tpu.memory_space<vmem>>) attributes {dimension_semantics = [], scalar_prefetch = 0 : i64, scratch_operands = 1 : i64, tpu.core_type = #tpu.core_type<tc>} {
    %c0 = arith.constant 0 : index
    %c0_0 = arith.constant 0 : index
    %0 = vector.load %arg0[%c0, %c0_0] : memref<16x16xf32, #tpu.memory_space<vmem>>, vector<16x16xf32>
    %c0_1 = arith.constant 0 : index
    %c0_2 = arith.constant 0 : index
    %1 = vector.load %arg2[%c0_1, %c0_2] : memref<16x32xf32, #tpu.memory_space<vmem>>, vector<16x32xf32>
    %cst = arith.constant dense<0.000000e+00> : vector<16x32xf32>
    %2 = tpu.matmul %0, %1, %cst {dimension_numbers = #tpu.dot_dimension_numbers<[1], [0], [0], [1], [0, 0, 1, 1], [], []>} : vector<16x16xf32>, vector<16x32xf32>, vector<16x32xf32> -> vector<16x32xf32>
    %c0_3 = arith.constant 0 : index
    %c0_4 = arith.constant 0 : index
    %3 = vector.load %arg4[%c0_3, %c0_4] : memref<1x32xf32, #tpu.memory_space<vmem>>, vector<1x32xf32>
    %4 = vector.broadcast %3 : vector<1x32xf32> to vector<16x32xf32>
    %5 = arith.addf %2, %4 : vector<16x32xf32>
    %c0_5 = arith.constant 0 : index
    %c0_6 = arith.constant 0 : index
    %6 = vector.load %arg8[%c0_5, %c0_6] : memref<16x32xf32, #tpu.memory_space<vmem>>, vector<16x32xf32>
    tpu.vector_store %arg8[%c0_5, %c0_6], %5 {strides = array<i32>} : memref<16x32xf32, #tpu.memory_space<vmem>>, vector<16x32xf32>,
    %c0_7 = arith.constant 0 : index
    %c0_8 = arith.constant 0 : index
    %7 = vector.load %arg1[%c0_7, %c0_8] : memref<2x1xi32, #tpu.memory_space<vmem>>, vector<2x1xi32>
    %c0_9 = arith.constant 0 : index
    %c0_10 = arith.constant 0 : index
    %8 = vector.load %arg3[%c0_9, %c0_10] : memref<32x32xf32, #tpu.memory_space<vmem>>, vector<32x32xf32>
    %cst_11 = arith.constant 0.000000e+00 : f32
    %9 = vector.broadcast %cst_11 : f32 to vector<2x32xf32>
    %c0_i32 = arith.constant 0 : i32
    %c2_i32 = arith.constant 2 : i32
    %10 = arith.muli %c0_i32, %c2_i32 : i32
    %11 = arith.index_cast %10 : i32 to index
    %c0_12 = arith.constant 0 : index
    %12 = vector.load %arg8[%11, %c0_12] : memref<16x32xf32, #tpu.memory_space<vmem>>, vector<2x32xf32>
    %cst_13 = arith.constant dense<0.000000e+00> : vector<2x32xf32>
    %13 = tpu.matmul %9, %8, %cst_13 {dimension_numbers = #tpu.dot_dimension_numbers<[1], [0], [0], [1], [0, 0, 1, 1], [], []>} : vector<2x32xf32>, vector<32x32xf32>, vector<2x32xf32> -> vector<2x32xf32>
    %14 = arith.addf %12, %13 : vector<2x32xf32>
    %15 = math.tanh %14 : vector<2x32xf32>
    %16 = vector.broadcast %c0_i32 : i32 to vector<2x1xi32>
    %17 = arith.cmpi slt, %16, %7 : vector<2x1xi32>
    %18 = vector.shape_cast %17 : vector<2x1xi1> to vector<2x1xi1>
    %19 = vector.broadcast %18 : vector<2x1xi1> to vector<2x32xi1>
    %20 = arith.select %19, %15, %9 : vector<2x32xi1>, vector<2x32xf32>
    %c1_i32 = arith.constant 1 : i32
    %c2_i32_14 = arith.constant 2 : i32
    %21 = arith.muli %c1_i32, %c2_i32_14 : i32
    %22 = arith.index_cast %21 : i32 to index
    %c0_15 = arith.constant 0 : index
    %23 = vector.load %arg8[%22, %c0_15] : memref<16x32xf32, #tpu.memory_space<vmem>>, vector<2x32xf32>
    %cst_16 = arith.constant dense<0.000000e+00> : vector<2x32xf32>
    %24 = tpu.matmul %20, %8, %cst_16 {dimension_numbers = #tpu.dot_dimension_numbers<[1], [0], [0], [1], [0, 0, 1, 1], [], []>} : vector<2x32xf32>, vector<32x32xf32>, vector<2x32xf32> -> vector<2x32xf32>
    %25 = arith.addf %23, %24 : vector<2x32xf32>
    %26 = math.tanh %25 : vector<2x32xf32>
    %27 = vector.broadcast %c1_i32 : i32 to vector<2x1xi32>
    %28 = arith.cmpi slt, %27, %7 : vector<2x1xi32>
    %29 = vector.shape_cast %28 : vector<2x1xi1> to vector<2x1xi1>
    %30 = vector.broadcast %29 : vector<2x1xi1> to vector<2x32xi1>
    %31 = arith.select %30, %26, %20 : vector<2x32xi1>, vector<2x32xf32>
    %c2_i32_17 = arith.constant 2 : i32
    %c2_i32_18 = arith.constant 2 : i32
    %32 = arith.muli %c2_i32_17, %c2_i32_18 : i32
    %33 = arith.index_cast %32 : i32 to index
    %c0_19 = arith.constant 0 : index
    %34 = vector.load %arg8[%33, %c0_19] : memref<16x32xf32, #tpu.memory_space<vmem>>, vector<2x32xf32>
    %cst_20 = arith.constant dense<0.000000e+00> : vector<2x32xf32>
    %35 = tpu.matmul %31, %8, %cst_20 {dimension_numbers = #tpu.dot_dimension_numbers<[1], [0], [0], [1], [0, 0, 1, 1], [], []>} : vector<2x32xf32>, vector<32x32xf32>, vector<2x32xf32> -> vector<2x32xf32>
    %36 = arith.addf %34, %35 : vector<2x32xf32>
    %37 = math.tanh %36 : vector<2x32xf32>
    %38 = vector.broadcast %c2_i32_17 : i32 to vector<2x1xi32>
    %39 = arith.cmpi slt, %38, %7 : vector<2x1xi32>
    %40 = vector.shape_cast %39 : vector<2x1xi1> to vector<2x1xi1>
    %41 = vector.broadcast %40 : vector<2x1xi1> to vector<2x32xi1>
    %42 = arith.select %41, %37, %31 : vector<2x32xi1>, vector<2x32xf32>
    %c3_i32 = arith.constant 3 : i32
    %c2_i32_21 = arith.constant 2 : i32
    %43 = arith.muli %c3_i32, %c2_i32_21 : i32
    %44 = arith.index_cast %43 : i32 to index
    %c0_22 = arith.constant 0 : index
    %45 = vector.load %arg8[%44, %c0_22] : memref<16x32xf32, #tpu.memory_space<vmem>>, vector<2x32xf32>
    %cst_23 = arith.constant dense<0.000000e+00> : vector<2x32xf32>
    %46 = tpu.matmul %42, %8, %cst_23 {dimension_numbers = #tpu.dot_dimension_numbers<[1], [0], [0], [1], [0, 0, 1, 1], [], []>} : vector<2x32xf32>, vector<32x32xf32>, vector<2x32xf32> -> vector<2x32xf32>
    %47 = arith.addf %45, %46 : vector<2x32xf32>
    %48 = math.tanh %47 : vector<2x32xf32>
    %49 = vector.broadcast %c3_i32 : i32 to vector<2x1xi32>
    %50 = arith.cmpi slt, %49, %7 : vector<2x1xi32>
    %51 = vector.shape_cast %50 : vector<2x1xi1> to vector<2x1xi1>
    %52 = vector.broadcast %51 : vector<2x1xi1> to vector<2x32xi1>
    %53 = arith.select %52, %48, %42 : vector<2x32xi1>, vector<2x32xf32>
    %c4_i32 = arith.constant 4 : i32
    %c2_i32_24 = arith.constant 2 : i32
    %54 = arith.muli %c4_i32, %c2_i32_24 : i32
    %55 = arith.index_cast %54 : i32 to index
    %c0_25 = arith.constant 0 : index
    %56 = vector.load %arg8[%55, %c0_25] : memref<16x32xf32, #tpu.memory_space<vmem>>, vector<2x32xf32>
    %cst_26 = arith.constant dense<0.000000e+00> : vector<2x32xf32>
    %57 = tpu.matmul %53, %8, %cst_26 {dimension_numbers = #tpu.dot_dimension_numbers<[1], [0], [0], [1], [0, 0, 1, 1], [], []>} : vector<2x32xf32>, vector<32x32xf32>, vector<2x32xf32> -> vector<2x32xf32>
    %58 = arith.addf %56, %57 : vector<2x32xf32>
    %59 = math.tanh %58 : vector<2x32xf32>
    %60 = vector.broadcast %c4_i32 : i32 to vector<2x1xi32>
    %61 = arith.cmpi slt, %60, %7 : vector<2x1xi32>
    %62 = vector.shape_cast %61 : vector<2x1xi1> to vector<2x1xi1>
    %63 = vector.broadcast %62 : vector<2x1xi1> to vector<2x32xi1>
    %64 = arith.select %63, %59, %53 : vector<2x32xi1>, vector<2x32xf32>
    %c5_i32 = arith.constant 5 : i32
    %c2_i32_27 = arith.constant 2 : i32
    %65 = arith.muli %c5_i32, %c2_i32_27 : i32
    %66 = arith.index_cast %65 : i32 to index
    %c0_28 = arith.constant 0 : index
    %67 = vector.load %arg8[%66, %c0_28] : memref<16x32xf32, #tpu.memory_space<vmem>>, vector<2x32xf32>
    %cst_29 = arith.constant dense<0.000000e+00> : vector<2x32xf32>
    %68 = tpu.matmul %64, %8, %cst_29 {dimension_numbers = #tpu.dot_dimension_numbers<[1], [0], [0], [1], [0, 0, 1, 1], [], []>} : vector<2x32xf32>, vector<32x32xf32>, vector<2x32xf32> -> vector<2x32xf32>
    %69 = arith.addf %67, %68 : vector<2x32xf32>
    %70 = math.tanh %69 : vector<2x32xf32>
    %71 = vector.broadcast %c5_i32 : i32 to vector<2x1xi32>
    %72 = arith.cmpi slt, %71, %7 : vector<2x1xi32>
    %73 = vector.shape_cast %72 : vector<2x1xi1> to vector<2x1xi1>
    %74 = vector.broadcast %73 : vector<2x1xi1> to vector<2x32xi1>
    %75 = arith.select %74, %70, %64 : vector<2x32xi1>, vector<2x32xf32>
    %c6_i32 = arith.constant 6 : i32
    %c2_i32_30 = arith.constant 2 : i32
    %76 = arith.muli %c6_i32, %c2_i32_30 : i32
    %77 = arith.index_cast %76 : i32 to index
    %c0_31 = arith.constant 0 : index
    %78 = vector.load %arg8[%77, %c0_31] : memref<16x32xf32, #tpu.memory_space<vmem>>, vector<2x32xf32>
    %cst_32 = arith.constant dense<0.000000e+00> : vector<2x32xf32>
    %79 = tpu.matmul %75, %8, %cst_32 {dimension_numbers = #tpu.dot_dimension_numbers<[1], [0], [0], [1], [0, 0, 1, 1], [], []>} : vector<2x32xf32>, vector<32x32xf32>, vector<2x32xf32> -> vector<2x32xf32>
    %80 = arith.addf %78, %79 : vector<2x32xf32>
    %81 = math.tanh %80 : vector<2x32xf32>
    %82 = vector.broadcast %c6_i32 : i32 to vector<2x1xi32>
    %83 = arith.cmpi slt, %82, %7 : vector<2x1xi32>
    %84 = vector.shape_cast %83 : vector<2x1xi1> to vector<2x1xi1>
    %85 = vector.broadcast %84 : vector<2x1xi1> to vector<2x32xi1>
    %86 = arith.select %85, %81, %75 : vector<2x32xi1>, vector<2x32xf32>
    %c7_i32 = arith.constant 7 : i32
    %c2_i32_33 = arith.constant 2 : i32
    %87 = arith.muli %c7_i32, %c2_i32_33 : i32
    %88 = arith.index_cast %87 : i32 to index
    %c0_34 = arith.constant 0 : index
    %89 = vector.load %arg8[%88, %c0_34] : memref<16x32xf32, #tpu.memory_space<vmem>>, vector<2x32xf32>
    %cst_35 = arith.constant dense<0.000000e+00> : vector<2x32xf32>
    %90 = tpu.matmul %86, %8, %cst_35 {dimension_numbers = #tpu.dot_dimension_numbers<[1], [0], [0], [1], [0, 0, 1, 1], [], []>} : vector<2x32xf32>, vector<32x32xf32>, vector<2x32xf32> -> vector<2x32xf32>
    %91 = arith.addf %89, %90 : vector<2x32xf32>
    %92 = math.tanh %91 : vector<2x32xf32>
    %93 = vector.broadcast %c7_i32 : i32 to vector<2x1xi32>
    %94 = arith.cmpi slt, %93, %7 : vector<2x1xi32>
    %95 = vector.shape_cast %94 : vector<2x1xi1> to vector<2x1xi1>
    %96 = vector.broadcast %95 : vector<2x1xi1> to vector<2x32xi1>
    %97 = arith.select %96, %92, %86 : vector<2x32xi1>, vector<2x32xf32>
    %c8_i32 = arith.constant 8 : i32
    %c0_36 = arith.constant 0 : index
    %c0_37 = arith.constant 0 : index
    %98 = vector.load %arg5[%c0_36, %c0_37] : memref<1x32xf32, #tpu.memory_space<vmem>>, vector<1x32xf32>
    %99 = vector.broadcast %98 : vector<1x32xf32> to vector<2x32xf32>
    %100 = arith.mulf %97, %99 : vector<2x32xf32>
    %cst_38 = arith.constant dense<0.000000e+00> : vector<2xf32>
    %101 = vector.multi_reduction <add>, %100, %cst_38 [1] : vector<2x32xf32> to vector<2xf32>
    %102 = vector.shape_cast %101 : vector<2xf32> to vector<2x1xf32>
    %c0_39 = arith.constant 0 : index
    %c0_40 = arith.constant 0 : index
    %103 = vector.load %arg6[%c0_39, %c0_40] : memref<1x1xf32, #tpu.memory_space<vmem>>, vector<1x1xf32>
    %104 = vector.broadcast %103 : vector<1x1xf32> to vector<2x1xf32>
    %105 = arith.addf %102, %104 : vector<2x1xf32>
    %c0_41 = arith.constant 0 : index
    %c0_42 = arith.constant 0 : index
    %106 = vector.load %arg7[%c0_41, %c0_42] : memref<2x1xf32, #tpu.memory_space<vmem>>, vector<2x1xf32>
    tpu.vector_store %arg7[%c0_41, %c0_42], %105 {strides = array<i32>} : memref<2x1xf32, #tpu.memory_space<vmem>>, vector<2x1xf32>,
    return
  }
}

</mosaic_0001>

<bundles_post_ra>
// kernel: tpu_custom_call.1
= control target key start
LH: loop header
LB: loop body
LE: loop exit
PB: predicated region body
PF: predicated region fallthrough
CT: control target
= control target key end

     0   :  { %s624_s0 = inlined_call_operand.hbm [shape: f32[16,16], index: 0, kind: input, shape index: {}]   ;;  %s625_s1 = inlined_call_operand.vmem [shape: s32[2,1], index: 1, kind: input, shape index: {}]   ;;  %s626_s2 = inlined_call_operand.hbm [shape: f32[16,32], index: 2, kind: input, shape index: {}]   ;;  %s627_s3 = inlined_call_operand.hbm [shape: f32[32,32], index: 3, kind: input, shape index: {}]   ;;  %s628_s4 = inlined_call_operand.vmem [shape: f32[1,32], index: 4, kind: input, shape index: {}]   ;;  %s629_s5 = inlined_call_operand.vmem [shape: f32[1,32], index: 5, kind: input, shape index: {}]   ;;  %s630_s6 = inlined_call_operand.<no memory space> [shape: f32[1,1], index: 6, kind: input, shape index: {}]   ;;  %s631_s7 = inlined_call_operand.vmem [shape: f32[2,1], index: 7, kind: output, shape index: {}]  }
   0x1   :  { %v12_v0 = vstv %s630_s6 }
   0x2   :  { %13 = vst [vmem:[#allocation3] sm:$0x1] %v12_v0 }
   0x3   :  { %14 = vsyncpa [#allocation5], 0 }
   0x4   :  { %15 = vsyncpa [#allocation7], 0  ;;  %s35_s28 = sshll.u32 %s626_s2, 4  ;;  %s521_s29 = smov [#allocation6]   ;;  %s36_s28 = int_to_ptr.hbm [resolvable:$true] %s35_s28 }
   0x5   :  { %s37_s30 = sshll.u32 %s521_s29, 4  ;;  %s20_s10 = sshll.u32 %s624_s0, 4  ;;  %s38_s30 = int_to_ptr.vmem [resolvable:$true] %s37_s30  ;;  %s21_s10 = int_to_ptr.hbm [resolvable:$true] %s20_s10 }
   0x6   :  { %s522_s11 = smov 128   ;;  %s523_s12 = smov 8  }
   0x7   :  { %43 = dma.hbm_to_vmem [thread:$0]  %s36_s28, 256, %s38_s30, [#allocation7], %s522_s11, %s522_s11, %s523_s12  }
   0x8   :  { %s524_s6 = smov [#allocation4]   ;;  %s48_s16 = sshll.u32 %s627_s3, 4  ;;  %s49_s16 = int_to_ptr.hbm [resolvable:$true] %s48_s16 }
   0x9   :  { %s22_s13 = sshll.u32 %s524_s6, 4  ;;  %s525_s2 = smov [#allocation8]   ;;  %s23_s13 = int_to_ptr.vmem [resolvable:$true] %s22_s13 }
   0xa   :  { %28 = dma.hbm_to_vmem [thread:$0]  %s21_s10, 256, %s23_s13, [#allocation5], %s522_s11, %s522_s11, %s523_s12  }
   0xb   :  { %s50_s17 = sshll.u32 %s525_s2, 4  ;;  %s51_s17 = int_to_ptr.vmem [resolvable:$true] %s50_s17 }
   0xc   :  { %56 = dma.hbm_to_vmem [thread:$0]  %s49_s16, 512, %s51_s17, [#allocation7], %s522_s11, %s522_s11, %s523_s12  }
   0xd   :  { %517 = dma.done.wait [#allocation5], 256  }
   0xe   :  { %518 = vsyncadd [#allocation5], 4294967040 }
   0xf   :  { %519 = dma.done.wait [#allocation7], 768  }
  0x10   :  { %520 = vsyncadd [#allocation7], 4294966528  ;;  %v526_v1 = vmov 0   ;;  %v78_v2 = vld [vmem:[#allocation6 + $0x8] sm:$0xff]  ;;  %v77_v3 = vld [vmem:[#allocation6] sm:$0xff]  ;;  %vm83_vm0 = vcmask 130048  }
  0x11   :  { %423 = vset.pattern.permute.xlu0 %v526_v1  ;;  %424 = vset.pattern.permute.xlu1 %v526_v1  ;;  %v75_v4 = vld [vmem:[#allocation4] sm:$0xff]  ;;  %v120_v5 = vld [vmem:[#allocation8 + $0x18] sm:$0xff]  ;;  %v119_v6 = vld [vmem:[#allocation8 + $0x10] sm:$0xff]  ;;  %v527_v11 = vmov 0.0   ;;  %vm113_vm4 = vcmask 261120  }
  0x12   :  { %425 = vset.pattern.permute.xlu2 %v526_v1  ;;  %104 = vmatpush.msra.mxu0 %v78_v2  ;;  %v586_v7 = vld [vmem:[%s625_s1] sm:$0x3]  ;;  %v117_v10 = vld [vmem:[#allocation8] sm:$0xff] }
  0x13   :  { %137 = vmatpush.msra.mxu1 %v120_v5  ;;  %170 = vmatpush.msra.mxu2 %v120_v5  ;;  %v118_v8 = vld [vmem:[#allocation8 + $0x8] sm:$0xff]  ;;  %vm147_vm1 = vcmp.gt.s32.totalorder %v586_v7, 0  ;;  %vm180_vm2 = vcmp.gt.s32.totalorder %v586_v7, 1  ;;  %vm345_vm3 = vcmp.gt.s32.totalorder %v586_v7, 6  ;;  %vm213_vm6 = vcmp.gt.s32.totalorder %v586_v7, 2 }
  0x14   :  { %105 = vmatpush.msra.mxu0 %v77_v3  ;;  %203 = vmatpush.msra.mxu3 %v120_v5  ;;  %v148_v9 = vsel %vm147_vm1, 1, %v526_v1  ;;  %v181_v12 = vsel %vm180_vm2, 1, %v526_v1  ;;  %v346_v13 = vsel %vm345_vm3, 1, %v526_v1  ;;  %v426_v14 = vld [vmem:[%s628_s4] ss:$0 sm:$0xff]  ;;  %v214_v23 = vsel %vm213_vm6, 1, %v526_v1 }
  0x15   :  { %407 = vmatmul.msk.f32.vlgmr.msra.gmra.mxu0 %vm83_vm0, %v75_v4  ;;  %138 = vmatpush.msra.mxu1 %v119_v6  ;;  %vm246_vm7 = vcmp.gt.s32.totalorder %v586_v7, 3  ;;  %vm378_vm8 = vcmp.gt.s32.totalorder %v586_v7, 7  ;;  %v76_v38 = vld [vmem:[#allocation4 + $0x8] sm:$0xff]  ;;  %vm279_vm11 = vcmp.gt.s32.totalorder %v586_v7, 4  ;;  %vm312_vm12 = vcmp.gt.s32.totalorder %v586_v7, 5 }
  0x16   :  { %150 = vperm.xlu0 %423, %v148_v9   ;;  %171 = vmatpush.msra.mxu2 %v119_v6  ;;  %v247_v24 = vsel %vm246_vm7, 1, %v526_v1  ;;  %v379_v25 = vsel %vm378_vm8, 1, %v526_v1  ;;  %v280_v39 = vsel %vm279_vm11, 1, %v526_v1  ;;  %v313_v40 = vsel %vm312_vm12, 1, %v526_v1  ;;  %v427_v7 = vld [vmem:[%s629_s5] ss:$0 sm:$0xff] }
  0x17   :  { %139 = vmatpush.msra.mxu1 %v118_v8  ;;  %204 = vmatpush.msra.mxu3 %v119_v6  ;;  %vm390_vm2 = vcmask 254976   ;;  %vm399_vm3 = vcmask 1024  }
  0x18   :  { %172 = vmatpush.msra.mxu2 %v118_v8  ;;  %335 = vmatpush.msrb.mxu0 %v120_v5 }
  0x19   :  { %140 = vmatpush.msra.mxu1 %v117_v10  ;;  %205 = vmatpush.msra.mxu3 %v118_v8 }
  0x1a   :  { %141 = vmatmul.f32.vlgmr.msra.gmra.mxu1 %v527_v11  ;;  %173 = vmatpush.msra.mxu2 %v117_v10 }
  0x1b   :  { %206 = vmatpush.msra.mxu3 %v117_v10  ;;  %236 = vmatpush.msrb.mxu1 %v120_v5 }
  0x1c   :  { %269 = vmatpush.msrb.mxu2 %v120_v5  ;;  %336 = vmatpush.msrb.mxu0 %v119_v6 }
  0x1d   :  { %302 = vmatpush.msrb.mxu3 %v120_v5  ;;  %237 = vmatpush.msrb.mxu1 %v119_v6 }
  0x1e   :  { %183 = vperm.xlu0 %423, %v181_v12   ;;  %270 = vmatpush.msrb.mxu2 %v119_v6  ;;  %v428_v12 = vld [vmem:[#allocation3] ss:$0 sm:$0xff] }
  0x1f   :  { %238 = vmatpush.msrb.mxu1 %v118_v8  ;;  %303 = vmatpush.msrb.mxu3 %v119_v6 }
  0x20   :  { %271 = vmatpush.msrb.mxu2 %v118_v8  ;;  %337 = vmatpush.msrb.mxu0 %v118_v8 }
  0x21   :  { %239 = vmatpush.msrb.mxu1 %v117_v10  ;;  %304 = vmatpush.msrb.mxu3 %v118_v8 }
  0x22   :  { %272 = vmatpush.msrb.mxu2 %v117_v10  ;;  %338 = vmatpush.msrb.mxu0 %v117_v10 }
  0x23   :  { %305 = vmatpush.msrb.mxu3 %v117_v10  ;;  %368 = vmatpush.msra.mxu1 %v120_v5 }
  0x24   :  { %216 = vperm.xlu1 %424, %v214_v23   ;;  %408 = vmatmul.msk.f32.gmra.mxu0 %vm83_vm0, %v76_v38 }
  0x25   :  { %369 = vmatpush.msra.mxu1 %v119_v6  ;;  %282 = vperm.xlu2 %425, %v280_v39  }
  0x26   :  { %348 = vperm.xlu0 %423, %v346_v13  }
  0x27   :  { %370 = vmatpush.msra.mxu1 %v118_v8 }
  0x29   :  { %371 = vmatpush.msra.mxu1 %v117_v10 }
  0x2c   :  { %249 = vperm.xlu1 %424, %v247_v24  }
  0x2d   :  { %315 = vperm.xlu2 %425, %v313_v40  }
  0x34   :  { %381 = vperm.xlu1 %424, %v379_v25  }
  0x7f   :  { %v283_v52 = vpop.permute.xlu2 %282 }
  0x80   :  { %vm284_vm14 = vcmp.eq.s32.totalorder %v283_v52, 1 }
  0x87   :  { %v316_v58 = vpop.permute.xlu2 %315 }
  0x88   :  { %v151_v20 = vpop.permute.xlu0 %150  ;;  %vm317_vm15 = vcmp.eq.s32.totalorder %v316_v58, 1 }
  0x89   :  { %vm152_vm5 = vcmp.eq.s32.totalorder %v151_v20, 1 }
  0x90   :  { %v184_v29 = vpop.permute.xlu0 %183 }
  0x91   :  { %vm185_vm9 = vcmp.eq.s32.totalorder %v184_v29, 1 }
  0x92   :  { %v107_v15 = vpop.f32.mrf.mxu0 }
  0x93   :  { %v108_v16 = vadd.f32 %v426_v14, %v107_v15 }
  0x95   :  { %114 = vst.msk [vmem:[#allocation2] sm:$0xff] %vm113_vm4, %v108_v16 }
  0x96   :  { %v217_v35 = vpop.permute.xlu1 %216 }
  0x97   :  { %v142_v17 = vpop.f32.mrf.mxu1  ;;  %vm218_vm10 = vcmp.eq.s32.totalorder %v217_v35, 1 }
  0x98   :  { %v349_v0 = vpop.permute.xlu0 %348 }
  0x99   :  { %vm350_vm0 = vcmp.eq.s32.totalorder %v349_v0, 1 }
  0x9c   :  { %v121_v18 = vld [vmem:[#allocation2] sm:$0x3]  ;;  %v154_v26 = vld [vmem:[#allocation2 + $0x2] sm:$0x3]  ;;  %v187_v32 = vld [vmem:[#allocation2 + $0x4] sm:$0x3] }
  0x9d   :  { %v145_v19 = vadd.f32 %v142_v17, %v121_v18  ;;  %v220_v41 = vld [vmem:[#allocation2 + $0x6] sm:$0x3] }
  0x9e   :  { %v250_v44 = vpop.permute.xlu1 %249 }
  0x9f   :  { %429 = vtanh.f32 %v145_v19  ;;  %vm251_vm13 = vcmp.eq.s32.totalorder %v250_v44, 1 }
  0xa1   :  { %v110_v47 = vpop.f32.mrf.mxu0 }
  0xa2   :  { %v111_v48 = vadd.f32 %v426_v14, %v110_v47 }
  0xa4   :  { %115 = vst.msk [vmem:[#allocation2 + $0x8] sm:$0xff] %vm113_vm4, %v111_v48 }
  0xa5   :  { %v430_v21 = vpop.eup %429 }
  0xa6   :  { %v153_v22 = vsel %vm152_vm5, %v430_v21, 0.0  ;;  %v382_v6 = vpop.permute.xlu1 %381 }
  0xa7   :  { %409 = vmatmul.msk.f32.vlgmr.msra.gmra.mxu2 %vm113_vm4, %v153_v22  ;;  %vm383_vm1 = vcmp.eq.s32.totalorder %v382_v6, 1 }
  0xab   :  { %v253_v49 = vld [vmem:[#allocation2 + $0x8] sm:$0x3]  ;;  %v286_v55 = vld [vmem:[#allocation2 + $0xa] sm:$0x3]  ;;  %v319_v61 = vld [vmem:[#allocation2 + $0xc] sm:$0x3] }
  0xac   :  { %v352_v3 = vld [vmem:[#allocation2 + $0xe] sm:$0x3] }
 0x12a   :  { %v175_v27 = vpop.f32.mrf.mxu2 }
 0x12b   :  { %v178_v28 = vadd.f32 %v175_v27, %v154_v26 }
 0x12d   :  { %431 = vtanh.f32 %v178_v28 }
 0x133   :  { %v432_v30 = vpop.eup %431 }
 0x134   :  { %v186_v31 = vsel %vm185_vm9, %v432_v30, %v153_v22 }
 0x135   :  { %410 = vmatmul.msk.f32.vlgmr.msra.gmra.mxu3 %vm113_vm4, %v186_v31 }
 0x1b8   :  { %v208_v33 = vpop.f32.mrf.mxu3 }
 0x1b9   :  { %v211_v34 = vadd.f32 %v208_v33, %v187_v32 }
 0x1bb   :  { %433 = vtanh.f32 %v211_v34 }
 0x1c1   :  { %v434_v36 = vpop.eup %433 }
 0x1c2   :  { %v219_v37 = vsel %vm218_vm10, %v434_v36, %v186_v31 }
 0x1c3   :  { %411 = vmatmul.msk.f32.vlgmr.msrb.gmra.mxu1 %vm113_vm4, %v219_v37 }
 0x240   :  { %v241_v42 = vpop.f32.mrf.mxu1 }
 0x241   :  { %v244_v43 = vadd.f32 %v241_v42, %v220_v41 }
 0x243   :  { %435 = vtanh.f32 %v244_v43 }
 0x249   :  { %v436_v45 = vpop.eup %435 }
 0x24a   :  { %v252_v46 = vsel %vm251_vm13, %v436_v45, %v219_v37 }
 0x24b   :  { %412 = vmatmul.msk.f32.vlgmr.msrb.gmra.mxu2 %vm113_vm4, %v252_v46 }
 0x2ce   :  { %v274_v50 = vpop.f32.mrf.mxu2 }
 0x2cf   :  { %v277_v51 = vadd.f32 %v274_v50, %v253_v49 }
 0x2d1   :  { %437 = vtanh.f32 %v277_v51 }
 0x2d7   :  { %v438_v53 = vpop.eup %437 }
 0x2d8   :  { %v285_v54 = vsel %vm284_vm14, %v438_v53, %v252_v46 }
 0x2d9   :  { %413 = vmatmul.msk.f32.vlgmr.msrb.gmra.mxu3 %vm113_vm4, %v285_v54 }
 0x35c   :  { %v307_v56 = vpop.f32.mrf.mxu3 }
 0x35d   :  { %v310_v57 = vadd.f32 %v307_v56, %v286_v55 }
 0x35f   :  { %439 = vtanh.f32 %v310_v57 }
 0x365   :  { %v440_v59 = vpop.eup %439 }
 0x366   :  { %v318_v60 = vsel %vm317_vm15, %v440_v59, %v285_v54 }
 0x367   :  { %414 = vmatmul.msk.f32.vlgmr.msrb.gmra.mxu0 %vm113_vm4, %v318_v60 }
 0x3e4   :  { %v340_v62 = vpop.f32.mrf.mxu0 }
 0x3e5   :  { %v343_v63 = vadd.f32 %v340_v62, %v319_v61 }
 0x3e7   :  { %441 = vtanh.f32 %v343_v63 }
 0x3ed   :  { %v442_v1 = vpop.eup %441 }
 0x3ee   :  { %v351_v2 = vsel %vm350_vm0, %v442_v1, %v318_v60 }
 0x3ef   :  { %415 = vmatmul.msk.f32.vlgmr.msra.gmra.mxu1 %vm113_vm4, %v351_v2 }
 0x46c   :  { %v373_v4 = vpop.f32.mrf.mxu1 }
 0x46d   :  { %v376_v5 = vadd.f32 %v373_v4, %v352_v3 }
 0x46f   :  { %443 = vtanh.f32 %v376_v5 }
 0x475   :  { %v444_v8 = vpop.eup %443 }
 0x476   :  { %v384_v9 = vsel %vm383_vm1, %v444_v8, %v351_v2 }
 0x477   :  { %v389_v10 = vmul.f32 %v427_v7, %v384_v9 }
 0x479   :  { %v391_v11 = vsel %vm390_vm2, %v389_v10, 0.0 }
 0x47a   :  { %392 = vadd.xlane.f32.xlu2 %v391_v11 }
 0x4ed   :  { %v393_v13 = vpop.xlane.xlu2 %392 }
 0x4ee   :  { %v398_v14 = vadd.f32 %v428_v12, %v393_v13 }
 0x4f0   :  { %400 = vst.msk [vmem:[%s631_s7] sm:$0x3] %vm399_vm3, %v398_v14 }
 0x4f1   :  { %405 = vsyncpa [#allocation5], 1 }
 0x4f2   :  { %406 = vsyncpa [#allocation7], 1 }

</bundles_post_ra>
